<compile_context>
chip_gen: v6e
topology: v6e:2x2x1
jax: 0.10.0
libtpu: 0.0.40
codegen_flags: <defaults>
</compile_context>

<pallas_src>
import functools

import jax
import jax.numpy as jnp
from jax.experimental import pallas as pl
from jax.experimental.pallas import tpu as pltpu


def _round_up(x, m):
    return (x + m - 1) // m * m


def _choose_tile_r(r_total, cap):
    """Row tile for the (rows, 128) spatial layout.

    Full extent if it fits; otherwise the largest multiple of 32 <= cap that
    divides r_total (32 keeps both the f32/bf16 logits block and the int8
    index block tile-aligned).  Returns 0 if no such divisor exists.
    """
    if r_total <= cap:
        return r_total
    t = cap - cap % 32
    while t >= 32:
        if r_total % t == 0:
            return t
        t -= 32
    return 0


def _dicece_kernel(x_ref, idx_ref, inter_ref, ground_ref, pred_ref, ce_ref,
                   *, n_class, has_pad):
    # grid = (batch, spatial_split, row_tile).  The row-tile axis is the
    # reduction: the output blocks keep the same block index across it and act
    # as resident VMEM accumulators (init at r == 0, write-back handled by the
    # pipeline when the (batch, split) block index changes).
    @pl.when(pl.program_id(2) == 0)
    def _init():
        inter_ref[...] = jnp.zeros_like(inter_ref)
        ground_ref[...] = jnp.zeros_like(ground_ref)
        pred_ref[...] = jnp.zeros_like(pred_ref)
        ce_ref[...] = jnp.zeros_like(ce_ref)

    x = x_ref[0].astype(jnp.float32)        # (C, Rt, 128) logits tile
    idx = idx_ref[0].astype(jnp.int32)      # (Rt, 128) class indices

    # Softmax over the class axis: C slabs -> pure VPU elementwise ops.
    m = jnp.max(x, axis=0)                  # (Rt, 128)
    e = jnp.exp(x - m[None, :, :])          # (C, Rt, 128)
    z = jnp.sum(e, axis=0)                  # (Rt, 128)
    inv_z = pl.reciprocal(z)                # EUP reciprocal (exact mode)

    if has_pad:
        # Padded pixels carry the sentinel index n_class.  Folding validity
        # into the single (Rt,128) reciprocal row zeroes their softmax mass
        # (Dice `pred` sum) without touching the (C,Rt,128) plane.
        valid = idx < n_class
        inv_z = jnp.where(valid, inv_z, 0.0)

    # Per-class partial sums, unrolled over C (no full-tile iota / one-hot).
    sel = jnp.zeros_like(m)                 # logit of the labelled class
    for c in range(n_class):
        eq = idx == c                       # (Rt, 128) bool
        p_c = e[c] * inv_z                  # softmax prob of class c
        sel = sel + jnp.where(eq, x[c], 0.0)
        inter_ref[0, 0, c, :] += jnp.sum(jnp.where(eq, p_c, 0.0), axis=0)
        ground_ref[0, 0, c, :] += jnp.sum(jnp.where(eq, 1.0, 0.0), axis=0)
        pred_ref[0, 0, c, :] += jnp.sum(p_c, axis=0)

    # Cross-entropy row: -log_softmax(x)[label] = m + log(z) - x[label].
    ce_row = m + jnp.log(z) - sel
    if has_pad:
        ce_row = jnp.where(valid, ce_row, 0.0)
    ce_ref[0, 0, 0, :] += jnp.sum(ce_row, axis=0)


def diceceloss(logits, target=None, *, class_index=None, lambda1=1.0,
               lambda2=1.0, smooth=1e-5, target_block_bytes=4 << 20,
               tile_r_cap=None):
    """Diceceloss forward (softmax=True, is_3D layout, default options).

    logits: (N, C, *spatial) float array (f32 or bf16; cast to f32 in-kernel).
    target: one-hot (N, C, *spatial) float array (module interface), or pass
        class_index=(N, *spatial) integer labels to skip the argmax HBM pass.
    """
    # TODO(synk): ce_weight / squared_pred / jaccard non-default options of
    # the module are not implemented (defaults only).
    n_batch, n_class = logits.shape[0], logits.shape[1]
    n_spatial = 1
    for d in logits.shape[2:]:
        n_spatial *= d

    x = logits.reshape(n_batch, n_class, n_spatial)        # metadata-only
    if class_index is None:
        if target is None:
            raise ValueError("pass either a one-hot target or class_index")
        # TODO(synk): exact one-hot target assumed for Dice (soft labels would
        # need the float target plane); matches the module's CE argmax.
        class_index = jnp.argmax(
            target.reshape(n_batch, n_class, n_spatial), axis=1)
    idx_dtype = jnp.int8 if n_class < 127 else jnp.int32
    idx = class_index.reshape(n_batch, n_spatial).astype(idx_dtype)

    # ---- spatial layout: (rows, 128) so every vreg is fully dense ----
    itemsize = jnp.dtype(x.dtype).itemsize
    r_total = _round_up(n_spatial, 128) // 128
    if tile_r_cap is None:
        cap = (target_block_bytes // (n_class * 128 * itemsize)) // 32 * 32
        cap = max(32, min(cap, 2048))       # bound per-plane temporaries
    else:
        cap = tile_r_cap
    tile_r = _choose_tile_r(r_total, cap)
    if tile_r == 0:
        # TODO(synk): no aligned divisor of the row count; pad rows up to a
        # tile multiple (costs one extra HBM copy of the inputs).
        tile_r = max(32, cap - cap % 32)
        r_pad = _round_up(r_total, tile_r)
    else:
        r_pad = r_total

    s_pad = r_pad * 128
    has_pad = s_pad != n_spatial
    if has_pad:
        # TODO(synk): only hit when n_spatial is not 128-aligned (or no tile
        # divisor exists); the jnp.pad is one extra HBM pass in that case.
        pad = s_pad - n_spatial
        x = jnp.pad(x, ((0, 0), (0, 0), (0, pad)))
        idx = jnp.pad(idx, ((0, 0), (0, pad)),
                      constant_values=jnp.array(n_class, idx_dtype))
    x = x.reshape(n_batch, n_class, r_pad, 128)
    idx = idx.reshape(n_batch, r_pad, 128)

    num_r_tiles = r_pad // tile_r
    # v7x megacore: with a single batch, split the spatial reduction so both
    # TensorCores get a grid slice (harmless on single-TC v5e/v6e).
    n_split = 2 if (n_batch == 1 and num_r_tiles % 2 == 0) else 1
    rpt = num_r_tiles // n_split

    # VMEM budget: double-buffered input blocks + f32 working planes + margin.
    plane = tile_r * 128 * 4
    x_block = n_class * tile_r * 128 * itemsize
    idx_block = tile_r * 128 * jnp.dtype(idx_dtype).itemsize
    vmem_limit = 2 * (x_block + idx_block) + 2 * n_class * plane \
        + 12 * plane + (8 << 20)
    vmem_limit = int(min(56 << 20, max(24 << 20, vmem_limit)))

    kernel = functools.partial(_dicece_kernel, n_class=n_class,
                               has_pad=has_pad)

    out_shapes = (
        jax.ShapeDtypeStruct((n_batch, n_split, n_class, 128), jnp.float32),
        jax.ShapeDtypeStruct((n_batch, n_split, n_class, 128), jnp.float32),
        jax.ShapeDtypeStruct((n_batch, n_split, n_class, 128), jnp.float32),
        jax.ShapeDtypeStruct((n_batch, n_split, 1, 128), jnp.float32),
    )
    out_spec_c = pl.BlockSpec((1, 1, n_class, 128),
                              lambda n, k, r: (n, k, 0, 0))
    out_spec_1 = pl.BlockSpec((1, 1, 1, 128),
                              lambda n, k, r: (n, k, 0, 0))

    inter, ground, pred, ce_part = pl.pallas_call(
        kernel,
        out_shape=out_shapes,
        grid_spec=pltpu.PrefetchScalarGridSpec(
            num_scalar_prefetch=0,
            grid=(n_batch, n_split, rpt),
            in_specs=[
                pl.BlockSpec((1, n_class, tile_r, 128),
                             lambda n, k, r: (n, 0, k * rpt + r, 0)),
                pl.BlockSpec((1, tile_r, 128),
                             lambda n, k, r: (n, k * rpt + r, 0)),
            ],
            out_specs=[out_spec_c, out_spec_c, out_spec_c, out_spec_1],
        ),
        compiler_params=pltpu.CompilerParams(
            dimension_semantics=("parallel", "parallel", "arbitrary"),
            vmem_limit_bytes=vmem_limit),
    )(x, idx)

    # Tiny final math (ratios / means) once, in plain JAX.
    inter = jnp.sum(inter, axis=(1, 3))      # (N, C)
    ground = jnp.sum(ground, axis=(1, 3))
    pred = jnp.sum(pred, axis=(1, 3))
    dice = jnp.mean(1.0 - (2.0 * inter + smooth) / (ground + pred + smooth))
    ce = jnp.sum(ce_part) / (n_batch * n_spatial)
    return lambda1 * dice + lambda2 * ce


def _reference(logits, target, lambda1=1.0, lambda2=1.0, smooth=1e-5):
    """Plain-JAX reference mirroring the PyTorch module (defaults)."""
    p = jax.nn.softmax(logits, axis=1)
    axes = tuple(range(2, logits.ndim))
    inter = jnp.sum(target * p, axis=axes)
    g = jnp.sum(target, axis=axes)
    pr = jnp.sum(p, axis=axes)
    dice = jnp.mean(1.0 - (2.0 * inter + smooth) / (g + pr + smooth))
    cls = jnp.argmax(target, axis=1)
    logp = jax.nn.log_softmax(logits, axis=1)
    ce = -jnp.mean(jnp.take_along_axis(logp, cls[:, None], axis=1))
    return lambda1 * dice + lambda2 * ce


def _run_case(key, *, n, c, dhw, tile_r_cap=None, use_index=False):
    k1, k2 = jax.random.split(key)
    d, h, w = dhw
    logits = jax.random.normal(k1, (n, c, d, h, w), dtype=jnp.float32)
    classes = jax.random.randint(k2, (n, d, h, w), 0, c)
    target = jax.nn.one_hot(classes, c, axis=1).astype(jnp.float32)

    if use_index:
        loss = diceceloss(logits, class_index=classes, tile_r_cap=tile_r_cap)
    else:
        loss = diceceloss(logits, target, tile_r_cap=tile_r_cap)
    loss = jax.block_until_ready(loss)
    ref = _reference(logits, target)
    assert jnp.allclose(loss, ref, atol=2e-5, rtol=2e-5), \
        (dhw, float(loss), float(ref))


if __name__ == "__main__":
    key = jax.random.PRNGKey(0)
    k1, k2, k3, k4 = jax.random.split(key, 4)
    # 1) 128-aligned spatial extent (S=256): zero-copy reshape, single tile.
    _run_case(k1, n=2, c=4, dhw=(4, 8, 8))
    # 2) Ragged spatial extent (S=105): pad-to-128 + in-kernel sentinel mask.
    _run_case(k2, n=2, c=4, dhw=(3, 5, 7))
    # 3) Multi-tile spatial reduction (S=8192, forced 32-row tiles).
    _run_case(k3, n=2, c=4, dhw=(8, 32, 32), tile_r_cap=32)
    # 4) Single batch -> spatial split axis (v7x megacore) + direct class
    #    indices (skips the wrapper argmax HBM pass).
    _run_case(k4, n=1, c=4, dhw=(8, 32, 32), tile_r_cap=32, use_index=True)
    print("KERNEL_OK")
</pallas_src>

<mosaic_0001>
module attributes {stable_mosaic.version = 11 : i64} {
  func.func @_dicece_kernel(%arg0: i32, %arg1: i32, %arg2: i32, %arg3: memref<1x4x2x128xf32, #tpu.memory_space<vmem>>, %arg4: memref<1x2x128xi8, #tpu.memory_space<vmem>>, %arg5: memref<1x1x4x128xf32, #tpu.memory_space<vmem>>, %arg6: memref<1x1x4x128xf32, #tpu.memory_space<vmem>>, %arg7: memref<1x1x4x128xf32, #tpu.memory_space<vmem>>, %arg8: memref<1x1x1x128xf32, #tpu.memory_space<vmem>>) attributes {dimension_semantics = [#tpu.dimension_semantics<parallel>, #tpu.dimension_semantics<parallel>, #tpu.dimension_semantics<arbitrary>], iteration_bounds = array<i64: 2, 1, 1>, scalar_prefetch = 0 : i64, scratch_operands = 0 : i64, tpu.core_type = #tpu.core_type<tc>, window_params = [{transform_indices = @transform_0, window_bounds = array<i64: 1, 4, 2, 128>}, {transform_indices = @transform_1, window_bounds = array<i64: 1, 2, 128>}, {transform_indices = @transform_2, window_bounds = array<i64: 1, 1, 4, 128>}, {transform_indices = @transform_3, window_bounds = array<i64: 1, 1, 4, 128>}, {transform_indices = @transform_4, window_bounds = array<i64: 1, 1, 4, 128>}, {transform_indices = @transform_5, window_bounds = array<i64: 1, 1, 1, 128>}]} {
    %c0_i32 = arith.constant 0 : i32
    %0 = arith.cmpi eq, %arg2, %c0_i32 : i32
    %1 = arith.extui %0 : i1 to i32
    %c0_i32_0 = arith.constant 0 : i32
    %2 = arith.cmpi ne, %1, %c0_i32_0 : i32
    scf.if %2 {
      %cst_140 = arith.constant 0.000000e+00 : f32
      %170 = vector.broadcast %cst_140 : f32 to vector<1x1x4x128xf32>
      %c0_141 = arith.constant 0 : index
      %c0_142 = arith.constant 0 : index
      %c0_143 = arith.constant 0 : index
      %c0_144 = arith.constant 0 : index
      %171 = vector.load %arg5[%c0_141, %c0_142, %c0_143, %c0_144] : memref<1x1x4x128xf32, #tpu.memory_space<vmem>>, vector<1x1x4x128xf32>
      tpu.vector_store %arg5[%c0_141, %c0_142, %c0_143, %c0_144], %170 {strides = array<i32>} : memref<1x1x4x128xf32, #tpu.memory_space<vmem>>, vector<1x1x4x128xf32>,
      %cst_145 = arith.constant 0.000000e+00 : f32
      %172 = vector.broadcast %cst_145 : f32 to vector<1x1x4x128xf32>
      %c0_146 = arith.constant 0 : index
      %c0_147 = arith.constant 0 : index
      %c0_148 = arith.constant 0 : index
      %c0_149 = arith.constant 0 : index
      %173 = vector.load %arg6[%c0_146, %c0_147, %c0_148, %c0_149] : memref<1x1x4x128xf32, #tpu.memory_space<vmem>>, vector<1x1x4x128xf32>
      tpu.vector_store %arg6[%c0_146, %c0_147, %c0_148, %c0_149], %172 {strides = array<i32>} : memref<1x1x4x128xf32, #tpu.memory_space<vmem>>, vector<1x1x4x128xf32>,
      %cst_150 = arith.constant 0.000000e+00 : f32
      %174 = vector.broadcast %cst_150 : f32 to vector<1x1x4x128xf32>
      %c0_151 = arith.constant 0 : index
      %c0_152 = arith.constant 0 : index
      %c0_153 = arith.constant 0 : index
      %c0_154 = arith.constant 0 : index
      %175 = vector.load %arg7[%c0_151, %c0_152, %c0_153, %c0_154] : memref<1x1x4x128xf32, #tpu.memory_space<vmem>>, vector<1x1x4x128xf32>
      tpu.vector_store %arg7[%c0_151, %c0_152, %c0_153, %c0_154], %174 {strides = array<i32>} : memref<1x1x4x128xf32, #tpu.memory_space<vmem>>, vector<1x1x4x128xf32>,
      %cst_155 = arith.constant 0.000000e+00 : f32
      %176 = vector.broadcast %cst_155 : f32 to vector<1x1x1x128xf32>
      %c0_156 = arith.constant 0 : index
      %c0_157 = arith.constant 0 : index
      %c0_158 = arith.constant 0 : index
      %c0_159 = arith.constant 0 : index
      %177 = vector.load %arg8[%c0_156, %c0_157, %c0_158, %c0_159] : memref<1x1x1x128xf32, #tpu.memory_space<vmem>>, vector<1x1x1x128xf32>
      tpu.vector_store %arg8[%c0_156, %c0_157, %c0_158, %c0_159], %176 {strides = array<i32>} : memref<1x1x1x128xf32, #tpu.memory_space<vmem>>, vector<1x1x1x128xf32>,
    } else {
    }
    %c0 = arith.constant 0 : index
    %c0_1 = arith.constant 0 : index
    %c0_2 = arith.constant 0 : index
    %c0_3 = arith.constant 0 : index
    %3 = vector.load %arg3[%c0, %c0_1, %c0_2, %c0_3] : memref<1x4x2x128xf32, #tpu.memory_space<vmem>>, vector<1x4x2x128xf32>
    %4 = vector.shape_cast %3 : vector<1x4x2x128xf32> to vector<4x2x128xf32>
    %c0_4 = arith.constant 0 : index
    %c0_5 = arith.constant 0 : index
    %c0_6 = arith.constant 0 : index
    %5 = vector.load %arg4[%c0_4, %c0_5, %c0_6] : memref<1x2x128xi8, #tpu.memory_space<vmem>>, vector<1x2x128xi8>
    %6 = vector.shape_cast %5 : vector<1x2x128xi8> to vector<2x128xi8>
    %7 = arith.extsi %6 : vector<2x128xi8> to vector<2x128xi32>
    %cst = arith.constant dense<0xFF800000> : vector<2x128xf32>
    %8 = vector.multi_reduction <maximumf>, %4, %cst [0] : vector<4x2x128xf32> to vector<2x128xf32>
    %9 = vector.shape_cast %8 : vector<2x128xf32> to vector<1x2x128xf32>
    %10 = vector.broadcast %9 : vector<1x2x128xf32> to vector<4x2x128xf32>
    %11 = arith.subf %4, %10 : vector<4x2x128xf32>
    %12 = math.exp %11 : vector<4x2x128xf32>
    %cst_7 = arith.constant dense<0.000000e+00> : vector<2x128xf32>
    %13 = vector.multi_reduction <add>, %12, %cst_7 [0] : vector<4x2x128xf32> to vector<2x128xf32>
    %14 = tpu.reciprocal %13 : vector<2x128xf32> -> vector<2x128xf32>
    %cst_8 = arith.constant 0.000000e+00 : f32
    %15 = vector.broadcast %cst_8 : f32 to vector<2x128xf32>
    %c0_i32_9 = arith.constant 0 : i32
    %16 = vector.broadcast %c0_i32_9 : i32 to vector<2x128xi32>
    %17 = arith.cmpi eq, %7, %16 : vector<2x128xi32>
    %18 = vector.extract_strided_slice %12 {offsets = [0, 0, 0], sizes = [1, 2, 128], strides = [1, 1, 1]} : vector<4x2x128xf32> to vector<1x2x128xf32>
    %19 = vector.shape_cast %18 : vector<1x2x128xf32> to vector<2x128xf32>
    %20 = arith.mulf %19, %14 : vector<2x128xf32>
    %21 = vector.extract_strided_slice %4 {offsets = [0, 0, 0], sizes = [1, 2, 128], strides = [1, 1, 1]} : vector<4x2x128xf32> to vector<1x2x128xf32>
    %22 = vector.shape_cast %21 : vector<1x2x128xf32> to vector<2x128xf32>
    %cst_10 = arith.constant 0.000000e+00 : f32
    %23 = vector.broadcast %cst_10 : f32 to vector<2x128xf32>
    %24 = arith.select %17, %22, %23 : vector<2x128xi1>, vector<2x128xf32>
    %25 = arith.addf %15, %24 : vector<2x128xf32>
    %c0_11 = arith.constant 0 : index
    %c0_12 = arith.constant 0 : index
    %c0_13 = arith.constant 0 : index
    %c0_14 = arith.constant 0 : index
    %26 = vector.load %arg5[%c0_11, %c0_12, %c0_13, %c0_14] : memref<1x1x4x128xf32, #tpu.memory_space<vmem>>, vector<1x1x1x128xf32>
    %27 = vector.shape_cast %26 : vector<1x1x1x128xf32> to vector<128xf32>
    %cst_15 = arith.constant 0.000000e+00 : f32
    %28 = vector.broadcast %cst_15 : f32 to vector<2x128xf32>
    %29 = arith.select %17, %20, %28 : vector<2x128xi1>, vector<2x128xf32>
    %cst_16 = arith.constant dense<0.000000e+00> : vector<128xf32>
    %30 = vector.multi_reduction <add>, %29, %cst_16 [0] : vector<2x128xf32> to vector<128xf32>
    %31 = arith.addf %27, %30 : vector<128xf32>
    %c0_17 = arith.constant 0 : index
    %c0_18 = arith.constant 0 : index
    %c0_19 = arith.constant 0 : index
    %c0_20 = arith.constant 0 : index
    %32 = vector.load %arg5[%c0_17, %c0_18, %c0_19, %c0_20] : memref<1x1x4x128xf32, #tpu.memory_space<vmem>>, vector<1x1x1x128xf32>
    %33 = vector.shape_cast %32 : vector<1x1x1x128xf32> to vector<128xf32>
    %34 = vector.shape_cast %31 : vector<128xf32> to vector<1x1x1x128xf32>
    tpu.vector_store %arg5[%c0_17, %c0_18, %c0_19, %c0_20], %34 {strides = array<i32>} : memref<1x1x4x128xf32, #tpu.memory_space<vmem>>, vector<1x1x1x128xf32>,
    %c0_21 = arith.constant 0 : index
    %c0_22 = arith.constant 0 : index
    %c0_23 = arith.constant 0 : index
    %c0_24 = arith.constant 0 : index
    %35 = vector.load %arg6[%c0_21, %c0_22, %c0_23, %c0_24] : memref<1x1x4x128xf32, #tpu.memory_space<vmem>>, vector<1x1x1x128xf32>
    %36 = vector.shape_cast %35 : vector<1x1x1x128xf32> to vector<128xf32>
    %cst_25 = arith.constant 1.000000e+00 : f32
    %cst_26 = arith.constant 0.000000e+00 : f32
    %37 = vector.broadcast %cst_25 : f32 to vector<2x128xf32>
    %38 = vector.broadcast %cst_26 : f32 to vector<2x128xf32>
    %39 = arith.select %17, %37, %38 : vector<2x128xi1>, vector<2x128xf32>
    %cst_27 = arith.constant dense<0.000000e+00> : vector<128xf32>
    %40 = vector.multi_reduction <add>, %39, %cst_27 [0] : vector<2x128xf32> to vector<128xf32>
    %41 = arith.addf %36, %40 : vector<128xf32>
    %c0_28 = arith.constant 0 : index
    %c0_29 = arith.constant 0 : index
    %c0_30 = arith.constant 0 : index
    %c0_31 = arith.constant 0 : index
    %42 = vector.load %arg6[%c0_28, %c0_29, %c0_30, %c0_31] : memref<1x1x4x128xf32, #tpu.memory_space<vmem>>, vector<1x1x1x128xf32>
    %43 = vector.shape_cast %42 : vector<1x1x1x128xf32> to vector<128xf32>
    %44 = vector.shape_cast %41 : vector<128xf32> to vector<1x1x1x128xf32>
    tpu.vector_store %arg6[%c0_28, %c0_29, %c0_30, %c0_31], %44 {strides = array<i32>} : memref<1x1x4x128xf32, #tpu.memory_space<vmem>>, vector<1x1x1x128xf32>,
    %c0_32 = arith.constant 0 : index
    %c0_33 = arith.constant 0 : index
    %c0_34 = arith.constant 0 : index
    %c0_35 = arith.constant 0 : index
    %45 = vector.load %arg7[%c0_32, %c0_33, %c0_34, %c0_35] : memref<1x1x4x128xf32, #tpu.memory_space<vmem>>, vector<1x1x1x128xf32>
    %46 = vector.shape_cast %45 : vector<1x1x1x128xf32> to vector<128xf32>
    %cst_36 = arith.constant dense<0.000000e+00> : vector<128xf32>
    %47 = vector.multi_reduction <add>, %20, %cst_36 [0] : vector<2x128xf32> to vector<128xf32>
    %48 = arith.addf %46, %47 : vector<128xf32>
    %c0_37 = arith.constant 0 : index
    %c0_38 = arith.constant 0 : index
    %c0_39 = arith.constant 0 : index
    %c0_40 = arith.constant 0 : index
    %49 = vector.load %arg7[%c0_37, %c0_38, %c0_39, %c0_40] : memref<1x1x4x128xf32, #tpu.memory_space<vmem>>, vector<1x1x1x128xf32>
    %50 = vector.shape_cast %49 : vector<1x1x1x128xf32> to vector<128xf32>
    %51 = vector.shape_cast %48 : vector<128xf32> to vector<1x1x1x128xf32>
    tpu.vector_store %arg7[%c0_37, %c0_38, %c0_39, %c0_40], %51 {strides = array<i32>} : memref<1x1x4x128xf32, #tpu.memory_space<vmem>>, vector<1x1x1x128xf32>,
    %c1_i32 = arith.constant 1 : i32
    %52 = vector.broadcast %c1_i32 : i32 to vector<2x128xi32>
    %53 = arith.cmpi eq, %7, %52 : vector<2x128xi32>
    %54 = vector.extract_strided_slice %12 {offsets = [1, 0, 0], sizes = [1, 2, 128], strides = [1, 1, 1]} : vector<4x2x128xf32> to vector<1x2x128xf32>
    %55 = vector.shape_cast %54 : vector<1x2x128xf32> to vector<2x128xf32>
    %56 = arith.mulf %55, %14 : vector<2x128xf32>
    %57 = vector.extract_strided_slice %4 {offsets = [1, 0, 0], sizes = [1, 2, 128], strides = [1, 1, 1]} : vector<4x2x128xf32> to vector<1x2x128xf32>
    %58 = vector.shape_cast %57 : vector<1x2x128xf32> to vector<2x128xf32>
    %cst_41 = arith.constant 0.000000e+00 : f32
    %59 = vector.broadcast %cst_41 : f32 to vector<2x128xf32>
    %60 = arith.select %53, %58, %59 : vector<2x128xi1>, vector<2x128xf32>
    %61 = arith.addf %25, %60 : vector<2x128xf32>
    %c0_42 = arith.constant 0 : index
    %c0_43 = arith.constant 0 : index
    %c1 = arith.constant 1 : index
    %c0_44 = arith.constant 0 : index
    %62 = vector.load %arg5[%c0_42, %c0_43, %c1, %c0_44] : memref<1x1x4x128xf32, #tpu.memory_space<vmem>>, vector<1x1x1x128xf32>
    %63 = vector.shape_cast %62 : vector<1x1x1x128xf32> to vector<128xf32>
    %cst_45 = arith.constant 0.000000e+00 : f32
    %64 = vector.broadcast %cst_45 : f32 to vector<2x128xf32>
    %65 = arith.select %53, %56, %64 : vector<2x128xi1>, vector<2x128xf32>
    %cst_46 = arith.constant dense<0.000000e+00> : vector<128xf32>
    %66 = vector.multi_reduction <add>, %65, %cst_46 [0] : vector<2x128xf32> to vector<128xf32>
    %67 = arith.addf %63, %66 : vector<128xf32>
    %c0_47 = arith.constant 0 : index
    %c0_48 = arith.constant 0 : index
    %c1_49 = arith.constant 1 : index
    %c0_50 = arith.constant 0 : index
    %68 = vector.load %arg5[%c0_47, %c0_48, %c1_49, %c0_50] : memref<1x1x4x128xf32, #tpu.memory_space<vmem>>, vector<1x1x1x128xf32>
    %69 = vector.shape_cast %68 : vector<1x1x1x128xf32> to vector<128xf32>
    %70 = vector.shape_cast %67 : vector<128xf32> to vector<1x1x1x128xf32>
    tpu.vector_store %arg5[%c0_47, %c0_48, %c1_49, %c0_50], %70 {strides = array<i32>} : memref<1x1x4x128xf32, #tpu.memory_space<vmem>>, vector<1x1x1x128xf32>,
    %c0_51 = arith.constant 0 : index
    %c0_52 = arith.constant 0 : index
    %c1_53 = arith.constant 1 : index
    %c0_54 = arith.constant 0 : index
    %71 = vector.load %arg6[%c0_51, %c0_52, %c1_53, %c0_54] : memref<1x1x4x128xf32, #tpu.memory_space<vmem>>, vector<1x1x1x128xf32>
    %72 = vector.shape_cast %71 : vector<1x1x1x128xf32> to vector<128xf32>
    %cst_55 = arith.constant 1.000000e+00 : f32
    %cst_56 = arith.constant 0.000000e+00 : f32
    %73 = vector.broadcast %cst_55 : f32 to vector<2x128xf32>
    %74 = vector.broadcast %cst_56 : f32 to vector<2x128xf32>
    %75 = arith.select %53, %73, %74 : vector<2x128xi1>, vector<2x128xf32>
    %cst_57 = arith.constant dense<0.000000e+00> : vector<128xf32>
    %76 = vector.multi_reduction <add>, %75, %cst_57 [0] : vector<2x128xf32> to vector<128xf32>
    %77 = arith.addf %72, %76 : vector<128xf32>
    %c0_58 = arith.constant 0 : index
    %c0_59 = arith.constant 0 : index
    %c1_60 = arith.constant 1 : index
    %c0_61 = arith.constant 0 : index
    %78 = vector.load %arg6[%c0_58, %c0_59, %c1_60, %c0_61] : memref<1x1x4x128xf32, #tpu.memory_space<vmem>>, vector<1x1x1x128xf32>
    %79 = vector.shape_cast %78 : vector<1x1x1x128xf32> to vector<128xf32>
    %80 = vector.shape_cast %77 : vector<128xf32> to vector<1x1x1x128xf32>
    tpu.vector_store %arg6[%c0_58, %c0_59, %c1_60, %c0_61], %80 {strides = array<i32>} : memref<1x1x4x128xf32, #tpu.memory_space<vmem>>, vector<1x1x1x128xf32>,
    %c0_62 = arith.constant 0 : index
    %c0_63 = arith.constant 0 : index
    %c1_64 = arith.constant 1 : index
    %c0_65 = arith.constant 0 : index
    %81 = vector.load %arg7[%c0_62, %c0_63, %c1_64, %c0_65] : memref<1x1x4x128xf32, #tpu.memory_space<vmem>>, vector<1x1x1x128xf32>
    %82 = vector.shape_cast %81 : vector<1x1x1x128xf32> to vector<128xf32>
    %cst_66 = arith.constant dense<0.000000e+00> : vector<128xf32>
    %83 = vector.multi_reduction <add>, %56, %cst_66 [0] : vector<2x128xf32> to vector<128xf32>
    %84 = arith.addf %82, %83 : vector<128xf32>
    %c0_67 = arith.constant 0 : index
    %c0_68 = arith.constant 0 : index
    %c1_69 = arith.constant 1 : index
    %c0_70 = arith.constant 0 : index
    %85 = vector.load %arg7[%c0_67, %c0_68, %c1_69, %c0_70] : memref<1x1x4x128xf32, #tpu.memory_space<vmem>>, vector<1x1x1x128xf32>
    %86 = vector.shape_cast %85 : vector<1x1x1x128xf32> to vector<128xf32>
    %87 = vector.shape_cast %84 : vector<128xf32> to vector<1x1x1x128xf32>
    tpu.vector_store %arg7[%c0_67, %c0_68, %c1_69, %c0_70], %87 {strides = array<i32>} : memref<1x1x4x128xf32, #tpu.memory_space<vmem>>, vector<1x1x1x128xf32>,
    %c2_i32 = arith.constant 2 : i32
    %88 = vector.broadcast %c2_i32 : i32 to vector<2x128xi32>
    %89 = arith.cmpi eq, %7, %88 : vector<2x128xi32>
    %90 = vector.extract_strided_slice %12 {offsets = [2, 0, 0], sizes = [1, 2, 128], strides = [1, 1, 1]} : vector<4x2x128xf32> to vector<1x2x128xf32>
    %91 = vector.shape_cast %90 : vector<1x2x128xf32> to vector<2x128xf32>
    %92 = arith.mulf %91, %14 : vector<2x128xf32>
    %93 = vector.extract_strided_slice %4 {offsets = [2, 0, 0], sizes = [1, 2, 128], strides = [1, 1, 1]} : vector<4x2x128xf32> to vector<1x2x128xf32>
    %94 = vector.shape_cast %93 : vector<1x2x128xf32> to vector<2x128xf32>
    %cst_71 = arith.constant 0.000000e+00 : f32
    %95 = vector.broadcast %cst_71 : f32 to vector<2x128xf32>
    %96 = arith.select %89, %94, %95 : vector<2x128xi1>, vector<2x128xf32>
    %97 = arith.addf %61, %96 : vector<2x128xf32>
    %c0_72 = arith.constant 0 : index
    %c0_73 = arith.constant 0 : index
    %c2 = arith.constant 2 : index
    %c0_74 = arith.constant 0 : index
    %98 = vector.load %arg5[%c0_72, %c0_73, %c2, %c0_74] : memref<1x1x4x128xf32, #tpu.memory_space<vmem>>, vector<1x1x1x128xf32>
    %99 = vector.shape_cast %98 : vector<1x1x1x128xf32> to vector<128xf32>
    %cst_75 = arith.constant 0.000000e+00 : f32
    %100 = vector.broadcast %cst_75 : f32 to vector<2x128xf32>
    %101 = arith.select %89, %92, %100 : vector<2x128xi1>, vector<2x128xf32>
    %cst_76 = arith.constant dense<0.000000e+00> : vector<128xf32>
    %102 = vector.multi_reduction <add>, %101, %cst_76 [0] : vector<2x128xf32> to vector<128xf32>
    %103 = arith.addf %99, %102 : vector<128xf32>
    %c0_77 = arith.constant 0 : index
    %c0_78 = arith.constant 0 : index
    %c2_79 = arith.constant 2 : index
    %c0_80 = arith.constant 0 : index
    %104 = vector.load %arg5[%c0_77, %c0_78, %c2_79, %c0_80] : memref<1x1x4x128xf32, #tpu.memory_space<vmem>>, vector<1x1x1x128xf32>
    %105 = vector.shape_cast %104 : vector<1x1x1x128xf32> to vector<128xf32>
    %106 = vector.shape_cast %103 : vector<128xf32> to vector<1x1x1x128xf32>
    tpu.vector_store %arg5[%c0_77, %c0_78, %c2_79, %c0_80], %106 {strides = array<i32>} : memref<1x1x4x128xf32, #tpu.memory_space<vmem>>, vector<1x1x1x128xf32>,
    %c0_81 = arith.constant 0 : index
    %c0_82 = arith.constant 0 : index
    %c2_83 = arith.constant 2 : index
    %c0_84 = arith.constant 0 : index
    %107 = vector.load %arg6[%c0_81, %c0_82, %c2_83, %c0_84] : memref<1x1x4x128xf32, #tpu.memory_space<vmem>>, vector<1x1x1x128xf32>
    %108 = vector.shape_cast %107 : vector<1x1x1x128xf32> to vector<128xf32>
    %cst_85 = arith.constant 1.000000e+00 : f32
    %cst_86 = arith.constant 0.000000e+00 : f32
    %109 = vector.broadcast %cst_85 : f32 to vector<2x128xf32>
    %110 = vector.broadcast %cst_86 : f32 to vector<2x128xf32>
    %111 = arith.select %89, %109, %110 : vector<2x128xi1>, vector<2x128xf32>
    %cst_87 = arith.constant dense<0.000000e+00> : vector<128xf32>
    %112 = vector.multi_reduction <add>, %111, %cst_87 [0] : vector<2x128xf32> to vector<128xf32>
    %113 = arith.addf %108, %112 : vector<128xf32>
    %c0_88 = arith.constant 0 : index
    %c0_89 = arith.constant 0 : index
    %c2_90 = arith.constant 2 : index
    %c0_91 = arith.constant 0 : index
    %114 = vector.load %arg6[%c0_88, %c0_89, %c2_90, %c0_91] : memref<1x1x4x128xf32, #tpu.memory_space<vmem>>, vector<1x1x1x128xf32>
    %115 = vector.shape_cast %114 : vector<1x1x1x128xf32> to vector<128xf32>
    %116 = vector.shape_cast %113 : vector<128xf32> to vector<1x1x1x128xf32>
    tpu.vector_store %arg6[%c0_88, %c0_89, %c2_90, %c0_91], %116 {strides = array<i32>} : memref<1x1x4x128xf32, #tpu.memory_space<vmem>>, vector<1x1x1x128xf32>,
    %c0_92 = arith.constant 0 : index
    %c0_93 = arith.constant 0 : index
    %c2_94 = arith.constant 2 : index
    %c0_95 = arith.constant 0 : index
    %117 = vector.load %arg7[%c0_92, %c0_93, %c2_94, %c0_95] : memref<1x1x4x128xf32, #tpu.memory_space<vmem>>, vector<1x1x1x128xf32>
    %118 = vector.shape_cast %117 : vector<1x1x1x128xf32> to vector<128xf32>
    %cst_96 = arith.constant dense<0.000000e+00> : vector<128xf32>
    %119 = vector.multi_reduction <add>, %92, %cst_96 [0] : vector<2x128xf32> to vector<128xf32>
    %120 = arith.addf %118, %119 : vector<128xf32>
    %c0_97 = arith.constant 0 : index
    %c0_98 = arith.constant 0 : index
    %c2_99 = arith.constant 2 : index
    %c0_100 = arith.constant 0 : index
    %121 = vector.load %arg7[%c0_97, %c0_98, %c2_99, %c0_100] : memref<1x1x4x128xf32, #tpu.memory_space<vmem>>, vector<1x1x1x128xf32>
    %122 = vector.shape_cast %121 : vector<1x1x1x128xf32> to vector<128xf32>
    %123 = vector.shape_cast %120 : vector<128xf32> to vector<1x1x1x128xf32>
    tpu.vector_store %arg7[%c0_97, %c0_98, %c2_99, %c0_100], %123 {strides = array<i32>} : memref<1x1x4x128xf32, #tpu.memory_space<vmem>>, vector<1x1x1x128xf32>,
    %c3_i32 = arith.constant 3 : i32
    %124 = vector.broadcast %c3_i32 : i32 to vector<2x128xi32>
    %125 = arith.cmpi eq, %7, %124 : vector<2x128xi32>
    %126 = vector.extract_strided_slice %12 {offsets = [3, 0, 0], sizes = [1, 2, 128], strides = [1, 1, 1]} : vector<4x2x128xf32> to vector<1x2x128xf32>
    %127 = vector.shape_cast %126 : vector<1x2x128xf32> to vector<2x128xf32>
    %128 = arith.mulf %127, %14 : vector<2x128xf32>
    %129 = vector.extract_strided_slice %4 {offsets = [3, 0, 0], sizes = [1, 2, 128], strides = [1, 1, 1]} : vector<4x2x128xf32> to vector<1x2x128xf32>
    %130 = vector.shape_cast %129 : vector<1x2x128xf32> to vector<2x128xf32>
    %cst_101 = arith.constant 0.000000e+00 : f32
    %131 = vector.broadcast %cst_101 : f32 to vector<2x128xf32>
    %132 = arith.select %125, %130, %131 : vector<2x128xi1>, vector<2x128xf32>
    %133 = arith.addf %97, %132 : vector<2x128xf32>
    %c0_102 = arith.constant 0 : index
    %c0_103 = arith.constant 0 : index
    %c3 = arith.constant 3 : index
    %c0_104 = arith.constant 0 : index
    %134 = vector.load %arg5[%c0_102, %c0_103, %c3, %c0_104] : memref<1x1x4x128xf32, #tpu.memory_space<vmem>>, vector<1x1x1x128xf32>
    %135 = vector.shape_cast %134 : vector<1x1x1x128xf32> to vector<128xf32>
    %cst_105 = arith.constant 0.000000e+00 : f32
    %136 = vector.broadcast %cst_105 : f32 to vector<2x128xf32>
    %137 = arith.select %125, %128, %136 : vector<2x128xi1>, vector<2x128xf32>
    %cst_106 = arith.constant dense<0.000000e+00> : vector<128xf32>
    %138 = vector.multi_reduction <add>, %137, %cst_106 [0] : vector<2x128xf32> to vector<128xf32>
    %139 = arith.addf %135, %138 : vector<128xf32>
    %c0_107 = arith.constant 0 : index
    %c0_108 = arith.constant 0 : index
    %c3_109 = arith.constant 3 : index
    %c0_110 = arith.constant 0 : index
    %140 = vector.load %arg5[%c0_107, %c0_108, %c3_109, %c0_110] : memref<1x1x4x128xf32, #tpu.memory_space<vmem>>, vector<1x1x1x128xf32>
    %141 = vector.shape_cast %140 : vector<1x1x1x128xf32> to vector<128xf32>
    %142 = vector.shape_cast %139 : vector<128xf32> to vector<1x1x1x128xf32>
    tpu.vector_store %arg5[%c0_107, %c0_108, %c3_109, %c0_110], %142 {strides = array<i32>} : memref<1x1x4x128xf32, #tpu.memory_space<vmem>>, vector<1x1x1x128xf32>,
    %c0_111 = arith.constant 0 : index
    %c0_112 = arith.constant 0 : index
    %c3_113 = arith.constant 3 : index
    %c0_114 = arith.constant 0 : index
    %143 = vector.load %arg6[%c0_111, %c0_112, %c3_113, %c0_114] : memref<1x1x4x128xf32, #tpu.memory_space<vmem>>, vector<1x1x1x128xf32>
    %144 = vector.shape_cast %143 : vector<1x1x1x128xf32> to vector<128xf32>
    %cst_115 = arith.constant 1.000000e+00 : f32
    %cst_116 = arith.constant 0.000000e+00 : f32
    %145 = vector.broadcast %cst_115 : f32 to vector<2x128xf32>
    %146 = vector.broadcast %cst_116 : f32 to vector<2x128xf32>
    %147 = arith.select %125, %145, %146 : vector<2x128xi1>, vector<2x128xf32>
    %cst_117 = arith.constant dense<0.000000e+00> : vector<128xf32>
    %148 = vector.multi_reduction <add>, %147, %cst_117 [0] : vector<2x128xf32> to vector<128xf32>
    %149 = arith.addf %144, %148 : vector<128xf32>
    %c0_118 = arith.constant 0 : index
    %c0_119 = arith.constant 0 : index
    %c3_120 = arith.constant 3 : index
    %c0_121 = arith.constant 0 : index
    %150 = vector.load %arg6[%c0_118, %c0_119, %c3_120, %c0_121] : memref<1x1x4x128xf32, #tpu.memory_space<vmem>>, vector<1x1x1x128xf32>
    %151 = vector.shape_cast %150 : vector<1x1x1x128xf32> to vector<128xf32>
    %152 = vector.shape_cast %149 : vector<128xf32> to vector<1x1x1x128xf32>
    tpu.vector_store %arg6[%c0_118, %c0_119, %c3_120, %c0_121], %152 {strides = array<i32>} : memref<1x1x4x128xf32, #tpu.memory_space<vmem>>, vector<1x1x1x128xf32>,
    %c0_122 = arith.constant 0 : index
    %c0_123 = arith.constant 0 : index
    %c3_124 = arith.constant 3 : index
    %c0_125 = arith.constant 0 : index
    %153 = vector.load %arg7[%c0_122, %c0_123, %c3_124, %c0_125] : memref<1x1x4x128xf32, #tpu.memory_space<vmem>>, vector<1x1x1x128xf32>
    %154 = vector.shape_cast %153 : vector<1x1x1x128xf32> to vector<128xf32>
    %cst_126 = arith.constant dense<0.000000e+00> : vector<128xf32>
    %155 = vector.multi_reduction <add>, %128, %cst_126 [0] : vector<2x128xf32> to vector<128xf32>
    %156 = arith.addf %154, %155 : vector<128xf32>
    %c0_127 = arith.constant 0 : index
    %c0_128 = arith.constant 0 : index
    %c3_129 = arith.constant 3 : index
    %c0_130 = arith.constant 0 : index
    %157 = vector.load %arg7[%c0_127, %c0_128, %c3_129, %c0_130] : memref<1x1x4x128xf32, #tpu.memory_space<vmem>>, vector<1x1x1x128xf32>
    %158 = vector.shape_cast %157 : vector<1x1x1x128xf32> to vector<128xf32>
    %159 = vector.shape_cast %156 : vector<128xf32> to vector<1x1x1x128xf32>
    tpu.vector_store %arg7[%c0_127, %c0_128, %c3_129, %c0_130], %159 {strides = array<i32>} : memref<1x1x4x128xf32, #tpu.memory_space<vmem>>, vector<1x1x1x128xf32>,
    %160 = math.log %13 : vector<2x128xf32>
    %161 = arith.addf %8, %160 : vector<2x128xf32>
    %162 = arith.subf %161, %133 : vector<2x128xf32>
    %c0_131 = arith.constant 0 : index
    %c0_132 = arith.constant 0 : index
    %c0_133 = arith.constant 0 : index
    %c0_134 = arith.constant 0 : index
    %163 = vector.load %arg8[%c0_131, %c0_132, %c0_133, %c0_134] : memref<1x1x1x128xf32, #tpu.memory_space<vmem>>, vector<1x1x1x128xf32>
    %164 = vector.shape_cast %163 : vector<1x1x1x128xf32> to vector<128xf32>
    %cst_135 = arith.constant dense<0.000000e+00> : vector<128xf32>
    %165 = vector.multi_reduction <add>, %162, %cst_135 [0] : vector<2x128xf32> to vector<128xf32>
    %166 = arith.addf %164, %165 : vector<128xf32>
    %c0_136 = arith.constant 0 : index
    %c0_137 = arith.constant 0 : index
    %c0_138 = arith.constant 0 : index
    %c0_139 = arith.constant 0 : index
    %167 = vector.load %arg8[%c0_136, %c0_137, %c0_138, %c0_139] : memref<1x1x1x128xf32, #tpu.memory_space<vmem>>, vector<1x1x1x128xf32>
    %168 = vector.shape_cast %167 : vector<1x1x1x128xf32> to vector<128xf32>
    %169 = vector.shape_cast %166 : vector<128xf32> to vector<1x1x1x128xf32>
    tpu.vector_store %arg8[%c0_136, %c0_137, %c0_138, %c0_139], %169 {strides = array<i32>} : memref<1x1x1x128xf32, #tpu.memory_space<vmem>>, vector<1x1x1x128xf32>,
    return
  }
  func.func @transform_0(%arg0: i32, %arg1: i32, %arg2: i32) -> (i32, i32, i32, i32) {
    %c1_i32 = arith.constant 1 : i32
    %0 = arith.muli %arg1, %c1_i32 : i32
    %1 = arith.addi %0, %arg2 : i32
    %c0_i32 = arith.constant 0 : i32
    %c0_i32_0 = arith.constant 0 : i32
    %c0_i32_1 = arith.constant 0 : i32
    return %arg0, %c0_i32, %1, %c0_i32_0 : i32, i32, i32, i32
  }
  func.func @transform_1(%arg0: i32, %arg1: i32, %arg2: i32) -> (i32, i32, i32) {
    %c1_i32 = arith.constant 1 : i32
    %0 = arith.muli %arg1, %c1_i32 : i32
    %1 = arith.addi %0, %arg2 : i32
    %c0_i32 = arith.constant 0 : i32
    %c0_i32_0 = arith.constant 0 : i32
    return %arg0, %1, %c0_i32 : i32, i32, i32
  }
  func.func @transform_2(%arg0: i32, %arg1: i32, %arg2: i32) -> (i32, i32, i32, i32) {
    %c0_i32 = arith.constant 0 : i32
    %c0_i32_0 = arith.constant 0 : i32
    %c0_i32_1 = arith.constant 0 : i32
    return %arg0, %arg1, %c0_i32, %c0_i32_0 : i32, i32, i32, i32
  }
  func.func @transform_3(%arg0: i32, %arg1: i32, %arg2: i32) -> (i32, i32, i32, i32) {
    %c0_i32 = arith.constant 0 : i32
    %c0_i32_0 = arith.constant 0 : i32
    %c0_i32_1 = arith.constant 0 : i32
    return %arg0, %arg1, %c0_i32, %c0_i32_0 : i32, i32, i32, i32
  }
  func.func @transform_4(%arg0: i32, %arg1: i32, %arg2: i32) -> (i32, i32, i32, i32) {
    %c0_i32 = arith.constant 0 : i32
    %c0_i32_0 = arith.constant 0 : i32
    %c0_i32_1 = arith.constant 0 : i32
    return %arg0, %arg1, %c0_i32, %c0_i32_0 : i32, i32, i32, i32
  }
  func.func @transform_5(%arg0: i32, %arg1: i32, %arg2: i32) -> (i32, i32, i32, i32) {
    %c0_i32 = arith.constant 0 : i32
    %c0_i32_0 = arith.constant 0 : i32
    %c0_i32_1 = arith.constant 0 : i32
    return %arg0, %arg1, %c0_i32, %c0_i32_0 : i32, i32, i32, i32
  }
}

</mosaic_0001>

<bundles_post_ra>
// kernel: tpu_custom_call.1
= control target key start
LH: loop header
LB: loop body
LE: loop exit
PB: predicated region body
PF: predicated region fallthrough
CT: control target
= control target key end

     0   :  { %s1593_s0 = inlined_call_operand.hbm [shape: f32[2,4,2,128], index: 0, kind: input, shape index: {}]   ;;  %s1594_s1 = inlined_call_operand.hbm [shape: s8[2,2,128], index: 1, kind: input, shape index: {}]   ;;  %s1595_s2 = inlined_call_operand.hbm [shape: f32[2,1,4,128], index: 2, kind: output, shape index: {0}]   ;;  %s1596_s3 = inlined_call_operand.hbm [shape: f32[2,1,4,128], index: 3, kind: output, shape index: {1}]   ;;  %s1597_s4 = inlined_call_operand.hbm [shape: f32[2,1,4,128], index: 4, kind: output, shape index: {2}]   ;;  %s1598_s5 = inlined_call_operand.hbm [shape: f32[2,1,1,128], index: 5, kind: output, shape index: {3}]  }
   0x1   :  { %1601 = sst [smem:[#allocation20_spill]] %s1593_s0 }
   0x2   :  { %11 = vsyncpa [#allocation3], 0 }
   0x3   :  { %13 = vsyncpa [#allocation3 + $0x1], 0 }
   0x4   :  { %14 = vsyncpa [#allocation6], 0 }
   0x5   :  { %16 = vsyncpa [#allocation6 + $0x1], 0 }
   0x6   :  { %17 = vsyncpa [#allocation4], 0 }
   0x7   :  { %19 = vsyncpa [#allocation4 + $0x1], 0 }
   0x8   :  { %20 = vsyncpa [#allocation9], 0 }
   0x9   :  { %22 = vsyncpa [#allocation9 + $0x1], 0 }
   0xa   :  { %23 = vsyncpa [#allocation12], 0 }
   0xb   :  { %25 = vsyncpa [#allocation12 + $0x1], 0  ;;  %s1202_s18 = smov 0   ;;  %s1204_s19 = smov 0  }
   0xc   :  { %s1206_s20 = smov 0   ;;  %s1208_s21 = smov 0  }
   0xd   :  { %s1210_s22 = smov 0   ;;  %s1212_s23 = smov 0  }
   0xe LB: > { %s1233_s24 = sadd.s32 4294967295, %s1161_s23   ;;  %s1599_s25 = sadd.s32 4294967294, %s1161_s23   ;;  %s1161_s23 = sphi %s1212_s23, %s31_s23   ;;  %s1157_s22 = sphi %s1210_s22, %s1619_s22   ;;  %s1153_s21 = sphi %s1208_s21, %s1618_s21   ;;  %s1149_s20 = sphi %s1206_s20, %s1617_s20   ;;  %s1145_s19 = sphi %s1204_s19, %s1616_s19   ;;  %s1141_s18 = sphi %s1202_s18, %s1615_s18  }
   0xf   : > { %s50_s26 = sadd.s32 1, %s1157_s22  ;;  %s61_s27 = sadd.s32 1, %s1149_s20 }
  0x10   : > { %p52_p0 = scmp.ge.s32.totalorder %s50_s26, 2  ;;  %p68_p1 = scmp.ne.s32.totalorder %s1149_s20, %s1145_s19 }
  0x11   : > { %p69_p2 = scmp.eq.s32.totalorder %s1161_s23, 0  ;;  %p74_p3 = scmp.ne.s32.totalorder %s1145_s19, %s1141_s18 }
  0x12   : > { %s1621_s26 = smov (%p52_p0, %s50_s26), 0  ;;  %p75_p5 = scmp.eq.s32.totalorder %s1233_s24, 0 }
  0x13   : > { %1602 = sst [smem:[#allocation18_spill]] %s1621_s26  ;;  %p1245_p4 = por %p69_p2, %p68_p1 }
  0x14   : > { %s56_s29 = ssub.s32 %s1157_s22, %s1621_s26  ;;  %p130_p6 = scmp.eq.s32.totalorder %s1233_s24, 1 }
  0x15   : > { %p59_p7 = scmp.eq.s32.totalorder %s56_s29, 0  ;;  %p1253_p8 = por %p75_p5, %p74_p3 }
  0x16   : > { %p1257_p9 = por %p130_p6, %p68_p1  ;;  %p136_p10 = scmp.eq.s32.totalorder %s1599_s25, 1 }
  0x17   : > { %s1264_s7 = scalar_select %p59_p7, %s1149_s20, %s61_s27  }
  0x18   : > { %p1266_p11 = por %p136_p10, %p74_p3  ;;  %p870_p13 = scmp.lt.s32.totalorder %s1161_s23, 2 }
  0x19   : > { %1606 = sst [smem:[#allocation19_spill]] %s1264_s7  ;;  %s1273_s9 = sand.u32 1, %s1149_s20  }
  0x1a   : > { %s819_s10 = sshll.u32 %s1273_s9, 3  ;;  %s837_s11 = sshll.u32 %s1157_s22, 7 }
  0x1b   : > { %s1608_s0 = sld [smem:[#allocation20_spill]]  ;;  %s244_s15 = scalar_lea.vmem [#allocation2], %s819_s10 }
  0x1c   : > { %s253_s16 = sshll.u32 %s244_s15, 4  ;;  %p1282_p0 = pnand %p870_p13, %p1245_p4  ;;  %s254_s16 = int_to_ptr.vmem [resolvable:$true] %s253_s16 }
  0x1d   : > { %p823_p1 = scmp.ge.s32.totalorder %s1161_s23, 1  ;;  %s241_s27 = scalar_lea.sflag [#allocation3], %s1273_s9 }
  0x1e   : > { %p937_p2 = pneg %p1282_p0  ;;  %s948_s29 = scalar_lea.vmem %s254_s16, 128 }
  0x1f   : > { %p949_p3 = scmp.ne.s32.totalorder %s254_s16, %s948_s29  ;;  %s1163_s10 = smov [#allocation2]  }
  0x21   : > { %s252_s14 = scalar_lea.hbm %s1608_s0, %s837_s11  ;;  %p951_p5 = pnand %p949_p3, %p937_p2 }
  0x22   : > { %s953_s11 = sshll.u32 %s1163_s10, 4  ;;  %s954_s11 = int_to_ptr.vmem [resolvable:$false] %s953_s11 }
  0x23   : > { %p952_p6 = pneg %p951_p5  ;;  %s955_s28 = scalar_lea.vmem %s954_s11, 256 }
  0x24   : > { %p956_p4 = scmp.lt.s32.totalorder %s254_s16, %s954_s11  ;;  %p957_p7 = scmp.lt.s32.totalorder %s955_s28, %s948_s29 }
  0x26   : > { %p958_p10 = por %p957_p7, %p956_p4 }
  0x28   : > { %p959_p13 = pnand %p958_p10, %p952_p6 }
  0x2a   : > { %962 = shalt.err (!%p959_p13)
}
  0x2b   : > { %s1164_s12 = smov 32   ;;  %s1165_s13 = smov 2  }
  0x2c   : > { %853 = dma.hbm_to_vmem [thread:$0]  (!%p1282_p0), %s252_s14, 128, %s254_s16, %s241_s27, %s1164_s12, %s1164_s12, %s1165_s13  }
  0x2d   : > { %p280_p3 = scmp.lt.s32.totalorder %s1161_s23, 3  ;;  %s822_s15 = sshll.u32 %s1157_s22, 4 }
  0x2e   : > { %s273_s28 = scalar_lea.hbm %s1594_s1, %s822_s15  ;;  %s266_s25 = scalar_lea.vmem [#allocation5], %s1273_s9 }
  0x2f   : > { %p1299_p5 = pnand %p823_p1, %p280_p3  ;;  %s275_s0 = sshll.u32 %s266_s25, 4  ;;  %s276_s0 = int_to_ptr.vmem [resolvable:$true] %s275_s0 }
  0x30   : > { %s264_s26 = scalar_lea.sflag [#allocation6], %s1273_s9  ;;  %s976_s7 = scalar_lea.vmem %s276_s0, 16 }
  0x31   : > { %p977_p6 = scmp.ne.s32.totalorder %s276_s0, %s976_s7  ;;  %s1166_s14 = smov [#allocation5]  }
  0x32   : > { %s981_s16 = sshll.u32 %s1166_s14, 4  ;;  %s982_s16 = int_to_ptr.vmem [resolvable:$false] %s981_s16 }
  0x33   : > { %p979_p4 = pnand %p977_p6, %p937_p2  ;;  %s983_s27 = scalar_lea.vmem %s982_s16, 32 }
  0x34   : > { %p984_p1 = scmp.lt.s32.totalorder %s276_s0, %s982_s16  ;;  %p985_p10 = scmp.lt.s32.totalorder %s983_s27, %s976_s7 }
  0x35   : > { %p980_p7 = pneg %p979_p4 }
  0x36   : > { %p986_p13 = por %p985_p10, %p984_p1 }
  0x38   : > { %p987_p3 = pnand %p986_p13, %p980_p7 }
  0x3a   : > { %990 = shalt.err (!%p987_p3)
}
  0x3b   : > { %856 = dma.hbm_to_vmem [thread:$0]  (!%p1282_p0), %s273_s28, 16, %s276_s0, %s264_s26  }
  0x3c   : > { %284 = sbr.rel (%p1299_p5) target bundleno = 211 (0xd3), region = 28  ;;  %s1316_s25 = sand.u32 (!%p1299_p5), 1, %s1145_s19  }
  0x3d   : > { %s824_s9 = sshll.u32 (!%p1299_p5), %s1316_s25, 3  ;;  %s287_s12 = scalar_lea.sflag (!%p1299_p5), [#allocation3], %s1316_s25 }
  0x3e   : > { %s290_s13 = scalar_lea.vmem (!%p1299_p5), [#allocation2], %s824_s9 }
  0x41   : > { %1120 = dma.done.wait (%p1253_p8), %s287_s12, 128  }
  0x42   : > { %1122 = vsyncadd (%p1253_p8), %s287_s12, 4294967168  ;;  %s296_s0 = scalar_lea.sflag [#allocation6], %s1316_s25  ;;  %s298_s26 = scalar_lea.vmem [#allocation5], %s1316_s25 }
  0x43   : > { %1124 = dma.done.wait (%p1253_p8), %s296_s0, 16  }
  0x44   : > { %1126 = vsyncadd (%p1253_p8), %s296_s0, 4294967280  ;;  %s825_s7 = sshll.u32 %s1316_s25, 2  ;;  %s1332_s17 = scalar_lea.vmem [#allocation11], %s1316_s25  ;;  %v1167_v0 = vmov 0.0   ;;  %vm359_vm0 = vcmask 1041408  }
  0x45   : > { %352 = vst [vmem:[%s1332_s17] sm:$0x1] %v1167_v0  ;;  %s1335_s15 = scalar_lea.vmem [#allocation8], %s825_s7  ;;  %s1338_s10 = scalar_lea.vmem [#allocation7], %s825_s7  ;;  %v1344_v1 = vld [vmem:[%s290_s13] sm:$0x3] }
  0x46   : > { %350 = vst [vmem:[%s1335_s15] sm:$0xf] %v1167_v0  ;;  %349 = vst [vmem:[%s1338_s10] sm:$0xf] %v1167_v0  ;;  %s1341_s29 = scalar_lea.vmem [#allocation10], %s825_s7  ;;  %v357_v2 = vld [vmem:[%s298_s26] sm:$0x1]  ;;  %v360_v5 = vsel %vm359_vm0, %v1344_v1, -inf }
  0x47   : > { %351 = vst [vmem:[%s1341_s29] sm:$0xf] %v1167_v0  ;;  %v1346_v3 = vld [vmem:[%s290_s13 + $0x2] sm:$0x3]  ;;  %v1348_v4 = vunpack.c.0.s8 %v357_v2  ;;  %v1354_v7 = vld [vmem:[%s290_s13 + $0x4] sm:$0x3]  ;;  %s550_s30 = sand.u32 1, %s1233_s24  }
  0x48   : > { %v361_v6 = vsel %vm359_vm0, %v1346_v3, -inf  ;;  %v1356_v8 = vld [vmem:[%s290_s13 + $0x6] sm:$0x3]  ;;  %v362_v10 = vsel %vm359_vm0, %v1354_v7, -inf  ;;  %s1397_s11 = sshll.u32 %s1153_s21, 6  ;;  %s588_s28 = sshll.u32 %s1335_s15, 4  ;;  %s1406_s28 = int_to_ptr.vmem [resolvable:$true] %s588_s28 }
  0x49   : > { %v364_v9 = vmax.f32 %v360_v5, %v361_v6  ;;  %v363_v11 = vsel %vm359_vm0, %v1356_v8, -inf  ;;  %vm387_vm1 = vcmp.eq.s32.totalorder %v1348_v4, 0  ;;  %vm423_vm2 = vcmp.eq.s32.totalorder %v1348_v4, 1  ;;  %s1404_s27 = scalar_lea.hbm %s1596_s3, %s1397_s11  ;;  %s1412_s24 = scalar_lea.sflag [#allocation9], %s550_s30 }
  0x4a   : > { %v365_v12 = vmax.f32 %v362_v10, %v363_v11  ;;  %v403_v13 = vsel %vm387_vm1, 1.0, %v1167_v0  ;;  %v439_v14 = vsel %vm423_vm2, 1.0, %v1167_v0  ;;  %vm459_vm3 = vcmp.eq.s32.totalorder %v1348_v4, 2  ;;  %s991_s9 = scalar_lea.vmem %s1406_s28, 64  ;;  %s1168_s12 = smov [#allocation8]  }
  0x4b   : > { %v404_v15 = vsel %vm359_vm0, %v403_v13, 0.0  ;;  %v440_v16 = vsel %vm359_vm0, %v439_v14, 0.0  ;;  %v475_v20 = vsel %vm459_vm3, 1.0, %v1167_v0  ;;  %vm495_vm4 = vcmp.eq.s32.totalorder %v1348_v4, 3  ;;  %p992_p8 = scmp.ne.s32.totalorder %s1406_s28, %s991_s9  ;;  %s995_s13 = sshll.u32 %s1168_s12, 4  ;;  %s996_s13 = int_to_ptr.vmem [resolvable:$false] %s995_s13 }
  0x4c   : > { %v1370_v17 = vmax.f32 %v364_v9, %v365_v12  ;;  %v405_v18 = vrot.slane %v404_v15, 4  ;;  %v441_v19 = vrot.slane %v440_v16, 4  ;;  %v476_v24 = vsel %vm359_vm0, %v475_v20, 0.0  ;;  %s997_s0 = scalar_lea.vmem %s996_s13, 128  ;;  %p998_p5 = scmp.lt.s32.totalorder %s1406_s28, %s996_s13 }
  0x4d   : > { %v477_v27 = vrot.slane %v476_v24, 4  ;;  %v511_v35 = vsel %vm495_vm4, 1.0, %v1167_v0  ;;  %v402_v45 = vld [vmem:[%s1335_s15] sm:$0x1]  ;;  %v438_v46 = vld [vmem:[%s1335_s15 + $0x1] sm:$0x1]  ;;  %p993_p0 = pnand %p992_p8, %p1257_p9  ;;  %p999_p6 = scmp.lt.s32.totalorder %s997_s0, %s991_s9 }
  0x4e   : > { %v368_v21 = vsub.f32 %v1346_v3, %v1370_v17  ;;  %v369_v22 = vsub.f32 %v1354_v7, %v1370_v17  ;;  %v370_v23 = vsub.f32 %v1356_v8, %v1370_v17  ;;  %v406_v25 = vadd.f32 %v405_v18, %v404_v15  ;;  %v474_v51 = vld [vmem:[%s1335_s15 + $0x2] sm:$0x1]  ;;  %v510_v59 = vld [vmem:[%s1335_s15 + $0x3] sm:$0x1] }
  0x4f   : > { %v442_v26 = vadd.f32 %v441_v19, %v440_v16  ;;  %v367_v31 = vsub.f32 %v1344_v1, %v1370_v17  ;;  %v478_v34 = vadd.f32 %v477_v27, %v476_v24  ;;  %v512_v36 = vsel %vm359_vm0, %v511_v35, 0.0  ;;  %p994_p2 = pneg %p993_p0  ;;  %p1000_p4 = por %p999_p6, %p998_p5 }
  0x50   : > { %v373_v28 = vmul.f32 1.442695, %v368_v21  ;;  %v375_v29 = vmul.f32 1.442695, %v369_v22  ;;  %v377_v30 = vmul.f32 1.442695, %v370_v23 }
  0x51   : > { %v407_v32 = vrot.slane %v406_v25, 2  ;;  %v443_v33 = vrot.slane %v442_v26, 2  ;;  %v371_v37 = vmul.f32 1.442695, %v367_v31  ;;  %v479_v40 = vrot.slane %v478_v34, 2  ;;  %p1001_p7 = pnand %p1000_p4, %p994_p2 }
  0x52   : > { %923 = vpow2.f32 %v373_v28  ;;  %v513_v41 = vrot.slane %v512_v36, 4 }
  0x53   : > { %v408_v38 = vadd.f32 %v407_v32, %v406_v25  ;;  %v444_v39 = vadd.f32 %v443_v33, %v442_v26  ;;  %925 = vpow2.f32 %v375_v29  ;;  %v480_v44 = vadd.f32 %v479_v40, %v478_v34 }
  0x54   : > { %927 = vpow2.f32 %v377_v30  ;;  %v514_v47 = vadd.f32 %v513_v41, %v512_v36 }
  0x55   : > { %v409_v42 = vrot.slane %v408_v38, 1  ;;  %v445_v43 = vrot.slane %v444_v39, 1  ;;  %929 = vpow2.f32 %v371_v37  ;;  %v481_v50 = vrot.slane %v480_v44, 1 }
  0x56   : > { %v515_v52 = vrot.slane %v514_v47, 2 }
  0x57   : > { %v410_v48 = vadd.f32 %v409_v42, %v408_v38  ;;  %v446_v49 = vadd.f32 %v445_v43, %v444_v39  ;;  %v482_v55 = vadd.f32 %v481_v50, %v480_v44 }
  0x58   : > { %v516_v56 = vadd.f32 %v515_v52, %v514_v47 }
  0x59   : > { %v411_v53 = vadd.f32 %v410_v48, %v402_v45  ;;  %v447_v54 = vadd.f32 %v446_v49, %v438_v46  ;;  %v483_v57 = vadd.f32 %v482_v55, %v474_v51 }
  0x5a   : > { %v517_v58 = vrot.slane %v516_v56, 1 }
  0x5b   : > { %412 = vst [vmem:[%s1335_s15] sm:$0x1] %v411_v53  ;;  %448 = vst [vmem:[%s1335_s15 + $0x1] sm:$0x1] %v447_v54 }
  0x5c   : > { %484 = vst [vmem:[%s1335_s15 + $0x2] sm:$0x1] %v483_v57  ;;  %v518_v60 = vadd.f32 %v517_v58, %v516_v56 }
  0x5e   : > { %v519_v63 = vadd.f32 %v518_v60, %v510_v59 }
  0x5f   : > { %v924_v61 = vpop.eup %923 }
  0x60   : > { %v926_v62 = vpop.eup %925  ;;  %v380_v2 = vsel %vm359_vm0, %v924_v61, 0.0  ;;  %520 = vst [vmem:[%s1335_s15 + $0x3] sm:$0x1] %v519_v63 }
  0x61   : > { %v928_v0 = vpop.eup %927  ;;  %v382_v6 = vsel %vm359_vm0, %v926_v62, 0.0 }
  0x62   : > { %v930_v5 = vpop.eup %929 }
  0x63   : > { %v379_v9 = vsel %vm359_vm0, %v930_v5, 0.0 }
  0x64   : > { %1004 = shalt.err (!%p1001_p7)
}
  0x65   : > { %s1005_s26 = scalar_lea.hbm %s1404_s27, 64  ;;  %s1009_s30 = scalar_lea.hbm %s1596_s3, 128 }
  0x66   : > { %p1006_p1 = scmp.ne.s32.totalorder %s1404_s27, %s1005_s26  ;;  %p1010_p3 = scmp.lt.s32.totalorder %s1404_s27, %s1596_s3 }
  0x67   : > { %p1011_p8 = scmp.lt.s32.totalorder %s1009_s30, %s1005_s26 }
  0x68   : > { %p1007_p10 = pnand %p1006_p1, %p1257_p9 }
  0x69   : > { %p1012_p0 = por %p1011_p8, %p1010_p3 }
  0x6a   : > { %p1008_p13 = pneg %p1007_p10 }
  0x6c   : > { %p1013_p2 = pnand %p1012_p0, %p1008_p13 }
  0x6e   : > { %1016 = shalt.err (!%p1013_p2)
}
  0x6f   : > { %843 = dma.vmem_to_hbm [thread:$0]  (%p1257_p9), %s1406_s28, 64, %s1404_s27, %s1412_s24   ;;  %v381_v10 = vadd.f32 %v380_v2, %v379_v9  ;;  %v384_v11 = vsel %vm359_vm0, %v928_v0, 0.0  ;;  %v389_v14 = vsel %vm387_vm1, %v1344_v1, 0.0  ;;  %v425_v15 = vsel %vm423_vm2, %v1346_v3, 0.0  ;;  %v413_v60 = vld [vmem:[%s1341_s29] sm:$0x1] }
  0x70   : > { %v426_v16 = vadd.f32 %v425_v15, %v389_v14  ;;  %v461_v18 = vsel %vm459_vm3, %v1354_v7, 0.0  ;;  %v497_v20 = vsel %vm495_vm4, %v1356_v8, 0.0  ;;  %s574_s28 = sshll.u32 %s1338_s10, 4  ;;  %s602_s27 = sshll.u32 %s1341_s29, 4  ;;  %s1493_s28 = int_to_ptr.vmem [resolvable:$true] %s574_s28  ;;  %s1503_s27 = int_to_ptr.vmem [resolvable:$true] %s602_s27 }
  0x71   : > { %v383_v12 = vadd.f32 %v382_v6, %v381_v10  ;;  %v449_v6 = vld [vmem:[%s1341_s29 + $0x1] sm:$0x1]  ;;  %s1491_s13 = scalar_lea.hbm %s1595_s2, %s1397_s11  ;;  %s1501_s7 = scalar_lea.hbm %s1597_s4, %s1397_s11 }
  0x72   : > { %v462_v19 = vadd.f32 %v461_v18, %v426_v16  ;;  %s546_s15 = scalar_lea.sflag [#allocation4], %s1316_s25  ;;  %s1017_s30 = scalar_lea.vmem %s1493_s28, 64 }
  0x73   : > { %v385_v13 = vadd.f32 %v384_v11, %v383_v12  ;;  %v391_v11 = vld [vmem:[%s1338_s10] sm:$0x1]  ;;  %p1018_p5 = scmp.ne.s32.totalorder %s1493_s28, %s1017_s30  ;;  %s1169_s14 = smov [#allocation7]  }
  0x74   : > { %v1448_v26 = vadd.f32 %v497_v20, %v462_v19  ;;  %s1021_s16 = sshll.u32 %s1169_s14, 4  ;;  %s1022_s16 = int_to_ptr.vmem [resolvable:$false] %s1021_s16 }
  0x75   : > { %931 = vrcp.f32 %v385_v13  ;;  %p1019_p6 = pnand %p1018_p5, %p1257_p9  ;;  %s1023_s9 = scalar_lea.vmem %s1022_s16, 128 }
  0x76   : > { %933 = vlog2.f32 %v385_v13  ;;  %v427_v13 = vld [vmem:[%s1338_s10 + $0x1] sm:$0x1]  ;;  %p1024_p7 = scmp.lt.s32.totalorder %s1493_s28, %s1022_s16  ;;  %p1025_p1 = scmp.lt.s32.totalorder %s1023_s9, %s1017_s30 }
  0x77   : > { %p1020_p4 = pneg %p1019_p6 }
  0x78   : > { %p1026_p10 = por %p1025_p1, %p1024_p7 }
  0x7a   : > { %p1027_p13 = pnand %p1026_p10, %p1020_p4 }
  0x82   : > { %v932_v21 = vpop.eup %931 }
  0x83   : > { %v934_v22 = vpop.eup %933  ;;  %v388_v23 = vmul.f32 %v932_v21, %v930_v5  ;;  %v424_v24 = vmul.f32 %v932_v21, %v924_v61  ;;  %v460_v25 = vmul.f32 %v932_v21, %v926_v62  ;;  %v496_v1 = vmul.f32 %v932_v21, %v928_v0  ;;  %v485_v21 = vld [vmem:[%s1341_s29 + $0x2] sm:$0x1] }
  0x84   : > { %v1450_v27 = vmul.f32 0.6931472, %v934_v22 }
  0x85   : > { %v392_v3 = vsel %vm387_vm1, %v388_v23, 0.0  ;;  %v414_v7 = vsel %vm359_vm0, %v388_v23, 0.0  ;;  %v428_v28 = vsel %vm423_vm2, %v424_v24, 0.0  ;;  %v450_v8 = vsel %vm359_vm0, %v424_v24, 0.0 }
  0x86   : > { %v393_v29 = vsel %vm359_vm0, %v392_v3, 0.0  ;;  %v415_v30 = vrot.slane %v414_v7, 4  ;;  %v429_v31 = vsel %vm359_vm0, %v428_v28, 0.0  ;;  %v451_v32 = vrot.slane %v450_v8, 4 }
  0x87   : > { %v394_v33 = vrot.slane %v393_v29, 4  ;;  %v430_v34 = vrot.slane %v429_v31, 4  ;;  %v464_v35 = vsel %vm459_vm3, %v460_v25, 0.0  ;;  %v486_v36 = vsel %vm359_vm0, %v460_v25, 0.0  ;;  %v463_v25 = vld [vmem:[%s1338_s10 + $0x2] sm:$0x1] }
  0x88   : > { %v416_v37 = vadd.f32 %v415_v30, %v414_v7  ;;  %v452_v38 = vadd.f32 %v451_v32, %v450_v8  ;;  %v465_v39 = vsel %vm359_vm0, %v464_v35, 0.0  ;;  %v487_v40 = vrot.slane %v486_v36, 4 }
  0x89   : > { %v395_v41 = vadd.f32 %v394_v33, %v393_v29  ;;  %v431_v42 = vadd.f32 %v430_v34, %v429_v31  ;;  %v466_v43 = vrot.slane %v465_v39, 4  ;;  %v500_v44 = vsel %vm495_vm4, %v496_v1, 0.0  ;;  %v499_v31 = vld [vmem:[%s1338_s10 + $0x3] sm:$0x1] }
  0x8a   : > { %v417_v45 = vrot.slane %v416_v37, 2  ;;  %v453_v46 = vrot.slane %v452_v38, 2  ;;  %v488_v47 = vadd.f32 %v487_v40, %v486_v36  ;;  %v501_v48 = vsel %vm359_vm0, %v500_v44, 0.0 }
  0x8b   : > { %v396_v49 = vrot.slane %v395_v41, 2  ;;  %v432_v50 = vrot.slane %v431_v42, 2  ;;  %v467_v51 = vadd.f32 %v466_v43, %v465_v39  ;;  %v502_v52 = vrot.slane %v501_v48, 4  ;;  %v521_v39 = vld [vmem:[%s1341_s29 + $0x3] sm:$0x1] }
  0x8c   : > { %v418_v53 = vadd.f32 %v417_v45, %v416_v37  ;;  %v454_v54 = vadd.f32 %v453_v46, %v452_v38  ;;  %v489_v55 = vrot.slane %v488_v47, 2  ;;  %v522_v56 = vsel %vm359_vm0, %v496_v1, 0.0 }
  0x8d   : > { %v397_v57 = vadd.f32 %v396_v49, %v395_v41  ;;  %v433_v4 = vadd.f32 %v432_v50, %v431_v42  ;;  %v468_v58 = vrot.slane %v467_v51, 2  ;;  %v503_v59 = vadd.f32 %v502_v52, %v501_v48 }
  0x8e   : > { %v419_v61 = vrot.slane %v418_v53, 1  ;;  %v455_v62 = vrot.slane %v454_v54, 1  ;;  %v490_v63 = vadd.f32 %v489_v55, %v488_v47  ;;  %v523_v0 = vrot.slane %v522_v56, 4 }
  0x8f   : > { %v398_v2 = vrot.slane %v397_v57, 1  ;;  %v434_v5 = vrot.slane %v433_v4, 1  ;;  %v469_v9 = vadd.f32 %v468_v58, %v467_v51  ;;  %v504_v10 = vrot.slane %v503_v59, 2 }
  0x90   : > { %v420_v12 = vadd.f32 %v419_v61, %v418_v53  ;;  %v456_v14 = vadd.f32 %v455_v62, %v454_v54  ;;  %v491_v15 = vrot.slane %v490_v63, 1  ;;  %v524_v16 = vadd.f32 %v523_v0, %v522_v56 }
  0x91   : > { %v399_v18 = vadd.f32 %v398_v2, %v397_v57  ;;  %v435_v19 = vadd.f32 %v434_v5, %v433_v4  ;;  %v470_v20 = vrot.slane %v469_v9, 1  ;;  %v505_v22 = vadd.f32 %v504_v10, %v503_v59 }
  0x92   : > { %v421_v23 = vadd.f32 %v420_v12, %v413_v60  ;;  %v457_v24 = vadd.f32 %v456_v14, %v449_v6  ;;  %v492_v1 = vadd.f32 %v491_v15, %v490_v63  ;;  %v525_v3 = vrot.slane %v524_v16, 2 }
  0x93   : > { %v400_v7 = vadd.f32 %v399_v18, %v391_v11  ;;  %v436_v28 = vadd.f32 %v435_v19, %v427_v13  ;;  %v471_v8 = vadd.f32 %v470_v20, %v469_v9  ;;  %v506_v29 = vrot.slane %v505_v22, 1 }
  0x94   : > { %422 = vst [vmem:[%s1341_s29] sm:$0x1] %v421_v23  ;;  %458 = vst [vmem:[%s1341_s29 + $0x1] sm:$0x1] %v457_v24  ;;  %v493_v30 = vadd.f32 %v492_v1, %v485_v21  ;;  %v526_v32 = vadd.f32 %v525_v3, %v524_v16  ;;  %v533_v33 = vadd.f32 %v1450_v27, %v1370_v17 }
  0x95   : > { %401 = vst [vmem:[%s1338_s10] sm:$0x1] %v400_v7  ;;  %437 = vst [vmem:[%s1338_s10 + $0x1] sm:$0x1] %v436_v28  ;;  %v472_v34 = vadd.f32 %v471_v8, %v463_v25  ;;  %v507_v35 = vadd.f32 %v506_v29, %v505_v22 }
  0x96   : > { %494 = vst [vmem:[%s1341_s29 + $0x2] sm:$0x1] %v493_v30  ;;  %v527_v36 = vrot.slane %v526_v32, 1  ;;  %v534_v37 = vsub.f32 %v533_v33, %v1448_v26 }
  0x97   : > { %473 = vst [vmem:[%s1338_s10 + $0x2] sm:$0x1] %v472_v34  ;;  %v508_v38 = vadd.f32 %v507_v35, %v499_v31 }
  0x98   : > { %v528_v17 = vadd.f32 %v527_v36, %v526_v32  ;;  %v536_v27 = vsel %vm359_vm0, %v534_v37, 0.0 }
  0x99   : > { %509 = vst [vmem:[%s1338_s10 + $0x3] sm:$0x1] %v508_v38  ;;  %v537_v26 = vrot.slane %v536_v27, 4 }
  0x9a   : > { %v529_v40 = vadd.f32 %v528_v17, %v521_v39 }
  0x9b   : > { %1030 = shalt.err (!%p1027_p13)
}
  0x9c   : > { %s1031_s10 = scalar_lea.hbm %s1491_s13, 64  ;;  %s1035_s0 = scalar_lea.hbm %s1595_s2, 128 }
  0x9d   : > { %p1032_p3 = scmp.ne.s32.totalorder %s1491_s13, %s1031_s10  ;;  %p1036_p2 = scmp.lt.s32.totalorder %s1491_s13, %s1595_s2 }
  0x9e   : > { %p1037_p5 = scmp.lt.s32.totalorder %s1035_s0, %s1031_s10 }
  0x9f   : > { %p1033_p8 = pnand %p1032_p3, %p1257_p9 }
  0xa0   : > { %p1038_p6 = por %p1037_p5, %p1036_p2 }
  0xa1   : > { %p1034_p0 = pneg %p1033_p8 }
  0xa3   : > { %p1039_p4 = pnand %p1038_p6, %p1034_p0 }
  0xa5   : > { %1042 = shalt.err (!%p1039_p4)
}
  0xa6   : > { %842 = dma.vmem_to_hbm [thread:$0]  (%p1257_p9), %s1493_s28, 64, %s1491_s13, %s546_s15   ;;  %v538_v41 = vadd.f32 %v537_v26, %v536_v27  ;;  %530 = vst [vmem:[%s1341_s29 + $0x3] sm:$0x1] %v529_v40 }
  0xa7   : > { %s1043_s30 = scalar_lea.vmem %s1503_s27, 64  ;;  %s1170_s16 = smov [#allocation10]  }
  0xa8   : > { %v539_v42 = vrot.slane %v538_v41, 2  ;;  %p1044_p7 = scmp.ne.s32.totalorder %s1503_s27, %s1043_s30  ;;  %s1047_s9 = sshll.u32 %s1170_s16, 4  ;;  %s1048_s9 = int_to_ptr.vmem [resolvable:$false] %s1047_s9 }
  0xa9   : > { %s1049_s10 = scalar_lea.vmem %s1048_s9, 128  ;;  %p1050_p13 = scmp.lt.s32.totalorder %s1503_s27, %s1048_s9 }
  0xaa   : > { %p1045_p1 = pnand %p1044_p7, %p1257_p9  ;;  %p1051_p3 = scmp.lt.s32.totalorder %s1049_s10, %s1043_s30 }
  0xac   : > { %p1046_p10 = pneg %p1045_p1  ;;  %p1052_p8 = por %p1051_p3, %p1050_p13 }
  0xae   : > { %p1053_p0 = pnand %p1052_p8, %p1046_p10 }
  0xb0   : > { %1056 = shalt.err (!%p1053_p0)
}
  0xb1   : > { %s1057_s29 = scalar_lea.hbm %s1501_s7, 64  ;;  %s1061_s15 = scalar_lea.hbm %s1597_s4, 128 }
  0xb2   : > { %p1058_p2 = scmp.ne.s32.totalorder %s1501_s7, %s1057_s29  ;;  %p1062_p4 = scmp.lt.s32.totalorder %s1501_s7, %s1597_s4 }
  0xb3   : > { %p1063_p7 = scmp.lt.s32.totalorder %s1061_s15, %s1057_s29 }
  0xb4   : > { %p1059_p5 = pnand %p1058_p2, %p1257_p9 }
  0xb5   : > { %p1064_p1 = por %p1063_p7, %p1062_p4 }
  0xb6   : > { %p1060_p6 = pneg %p1059_p5 }
  0xb8   : > { %p1065_p10 = pnand %p1064_p1, %p1060_p6 }
  0xba   : > { %1068 = shalt.err (!%p1065_p10)
}
  0xbb   : > { %844 = dma.vmem_to_hbm [thread:$0]  (%p1257_p9), %s1503_s27, 64, %s1501_s7, %s1412_s24   ;;  %v540_v43 = vadd.f32 %v539_v42, %v538_v41  ;;  %v535_v45 = vld [vmem:[%s1332_s17] sm:$0x1] }
  0xbc   : > { %s834_s0 = sshll.u32 %s1153_s21, 4  ;;  %s616_s26 = sshll.u32 %s1332_s17, 4  ;;  %s617_s26 = int_to_ptr.vmem [resolvable:$true] %s616_s26 }
  0xbd   : > { %v541_v44 = vrot.slane %v540_v43, 1  ;;  %s614_s16 = scalar_lea.hbm %s1598_s5, %s834_s0  ;;  %s561_s9 = scalar_lea.sflag [#allocation12], %s1316_s25 }
  0xbe   : > { %s1069_s10 = scalar_lea.vmem %s617_s26, 16  ;;  %s1171_s24 = smov [#allocation11]  }
  0xbf   : > { %v542_v46 = vadd.f32 %v541_v44, %v540_v43  ;;  %p1070_p13 = scmp.ne.s32.totalorder %s617_s26, %s1069_s10  ;;  %s1073_s27 = sshll.u32 %s1171_s24, 4  ;;  %s1074_s27 = int_to_ptr.vmem [resolvable:$false] %s1073_s27 }
  0xc0   : > { %s1075_s7 = scalar_lea.vmem %s1074_s27, 32  ;;  %p1076_p0 = scmp.lt.s32.totalorder %s617_s26, %s1074_s27 }
  0xc1   : > { %v543_v47 = vadd.f32 %v542_v46, %v535_v45  ;;  %p1071_p3 = pnand %p1070_p13, %p1257_p9  ;;  %p1077_p2 = scmp.lt.s32.totalorder %s1075_s7, %s1069_s10 }
  0xc3   : > { %544 = vst [vmem:[%s1332_s17] sm:$0x1] %v543_v47  ;;  %p1072_p8 = pneg %p1071_p3  ;;  %p1078_p5 = por %p1077_p2, %p1076_p0 }
  0xc5   : > { %p1079_p6 = pnand %p1078_p5, %p1072_p8 }
  0xc7   : > { %1082 = shalt.err (!%p1079_p6)
}
  0xc8   : > { %s1083_s21 = scalar_lea.hbm %s614_s16, 16  ;;  %s1087_s29 = scalar_lea.hbm %s1598_s5, 32 }
  0xc9   : > { %p1084_p4 = scmp.ne.s32.totalorder %s614_s16, %s1083_s21  ;;  %p1088_p10 = scmp.lt.s32.totalorder %s614_s16, %s1598_s5 }
  0xca   : > { %p1089_p13 = scmp.lt.s32.totalorder %s1087_s29, %s1083_s21 }
  0xcb   : > { %p1085_p7 = pnand %p1084_p4, %p1257_p9 }
  0xcc   : > { %p1090_p3 = por %p1089_p13, %p1088_p10 }
  0xcd   : > { %p1086_p1 = pneg %p1085_p7 }
  0xcf   : > { %p1091_p12 = pnand %p1090_p3, %p1086_p1 }
  0xd1   : > { %1094 = shalt.err (!%p1091_p12)
}
  0xd2   : > { %845 = dma.vmem_to_hbm [thread:$0]  (%p1257_p9), %s617_s26, 16, %s614_s16, %s561_s9  }
  0xd3 PF: > { %s628_s15 = sand.u32 1, %s1141_s18   ;;  %p1611_p8 = scmp.ge.s32.totalorder %s1161_s23, 2 }
  0xd4   : > { %s629_s11 = scalar_lea.sflag [#allocation4], %s628_s15 }
  0xd5   : > { %p858_p0 = pnand %p1611_p8, %p1266_p11 }
  0xd7   : > { %p859_p2 = pneg %p858_p0 }
  0xd9   : > { %1128 = dma.done.wait (%p859_p2), %s629_s11, 64  }
  0xda   : > { %1130 = vsyncadd (%p859_p2), %s629_s11, 4294967232  ;;  %s1612_s12 = sadd.s32 4294967294, %s1161_s23  }
  0xdb   : > { %s637_s0 = sand.u32 1, %s1612_s12  }
  0xdc   : > { %s638_s14 = scalar_lea.sflag [#allocation9], %s637_s0 }
  0xdd   : > { %1132 = dma.done.wait (%p859_p2), %s638_s14, 128  }
  0xde   : > { %1134 = vsyncadd (%p859_p2), %s638_s14, 4294967168  ;;  %s656_s6 = scalar_lea.sflag [#allocation12], %s628_s15 }
  0xdf   : > { %1136 = dma.done.wait (%p859_p2), %s656_s6, 16  }
  0xe0   : > { %1138 = vsyncadd (%p859_p2), %s656_s6, 4294967280  ;;  %s31_s23 = sadd.s32 1, %s1161_s23   ;;  %s1613_s8 = sld [smem:[#allocation19_spill]] }
  0xe1   : > { %p28_p9 = scmp.ge.s32.totalorder %s31_s23, 4   ;;  %s1614_s26 = sld [smem:[#allocation18_spill]] }
  0xe2   : > { %s1615_s18 = smov %s1145_s19  ;;  %s1616_s19 = smov %s1149_s20 }
  0xe3   : > { %s1618_s21 = smov %s1157_s22  ;;  %30 = sbr.rel (!%p28_p9) target bundleno = 14 (0xe), region = 139 }
  0xe6   : > { %s1617_s20 = smov %s1613_s8 }
  0xe7   : > { %s1619_s22 = smov %s1614_s26 }
  0xe8   :  { %660 = vsyncpa [#allocation3], 1 }
  0xe9   :  { %662 = vsyncpa [#allocation3 + $0x1], 1 }
  0xea   :  { %663 = vsyncpa [#allocation6], 1 }
  0xeb   :  { %665 = vsyncpa [#allocation6 + $0x1], 1 }
  0xec   :  { %666 = vsyncpa [#allocation4], 1 }
  0xed   :  { %668 = vsyncpa [#allocation4 + $0x1], 1 }
  0xee   :  { %669 = vsyncpa [#allocation9], 1 }
  0xef   :  { %671 = vsyncpa [#allocation9 + $0x1], 1 }
  0xf0   :  { %672 = vsyncpa [#allocation12], 1 }
  0xf1   :  { %674 = vsyncpa [#allocation12 + $0x1], 1 }

</bundles_post_ra>
